<compile_context>
chip_gen: v7x
topology: tpu7x:2x2x1
jax: 0.10.0
libtpu: 0.0.40
codegen_flags: <defaults>
</compile_context>

<pallas_src>
import functools

import jax
import jax.numpy as jnp
import numpy as np
from jax.experimental import pallas as pl
from jax.experimental.pallas import tpu as pltpu


def _moving_avg_kernel(x_ref, o_ref, *, kernel_size, pad, seq_len, n_ch, l_out):
    """x_ref: (TB, L*C) flattened rows; o_ref: (TB, l_out*C)."""
    x = x_ref[...]                                    # load the block once
    if pad > 0:
        first = x[:, :n_ch]                           # == x[:, 0, :]
        last = x[:, (seq_len - 1) * n_ch:]            # == x[:, -1, :]
        # Fused edge-replication padding, built in registers/VMEM scratch.
        xpad = jnp.concatenate([first] * pad + [x] + [last] * pad, axis=1)
    else:
        xpad = x
    acc = jnp.zeros((x.shape[0], l_out * n_ch), jnp.float32)
    # kernel_size is a small static int -> unrolled; each term is a static
    # lane-offset slice of the in-register padded block.
    for k in range(kernel_size):
        acc = acc + xpad[:, k * n_ch:(k + l_out) * n_ch].astype(jnp.float32)
    o_ref[...] = (acc * (1.0 / kernel_size)).astype(o_ref.dtype)


def _pick_batch_tile(batch, row_bytes):
    """Rows per grid step: ~2 MiB blocks, sublane-aligned, >=2 steps if possible."""
    target = 2 * 1024 * 1024
    if batch <= 8:
        # Second-to-minor block dim must be a multiple of 8 or the full dim.
        return batch
    tb = max(1, target // max(row_bytes, 1))
    tb = max(8, (tb // 8) * 8)
    # Keep at least two grid steps so both v7x TensorCores get work.
    half = max(8, (((batch + 1) // 2) // 8) * 8)
    # TODO(synk): add L-chunking with a (kernel_size-1) halo for very long
    # rows, where even an 8-row block would exceed the VMEM budget.
    return min(tb, half, batch)


def moving_avg(x, kernel_size, stride=1):
    """JAX/Pallas equivalent of the PyTorch moving_avg.forward.

    x: (B, L, C) -> (B, L_out, C) with
    L_out = (L + 2*((kernel_size-1)//2) - kernel_size)//stride + 1.
    (For even kernel_size L_out != L, matching the PyTorch module.)
    """
    B, L, C = x.shape
    pad = (kernel_size - 1) // 2
    l_pad = L + 2 * pad
    l_out = l_pad - kernel_size + 1            # dense (stride-1) output length
    assert l_out >= 1, "kernel_size too large for this sequence length"

    row_bytes = L * C * jnp.dtype(x.dtype).itemsize
    tb = _pick_batch_tile(B, row_bytes)
    n_blocks = (B + tb - 1) // tb

    kern = functools.partial(
        _moving_avg_kernel,
        kernel_size=kernel_size, pad=pad, seq_len=L, n_ch=C, l_out=l_out,
    )

    y2d = pl.pallas_call(
        kern,
        out_shape=jax.ShapeDtypeStruct((B, l_out * C), x.dtype),
        grid=(n_blocks,),
        in_specs=[pl.BlockSpec((tb, L * C), lambda i: (i, 0))],
        out_specs=pl.BlockSpec((tb, l_out * C), lambda i: (i, 0)),
        compiler_params=pltpu.CompilerParams(
            dimension_semantics=("parallel",),
            vmem_limit_bytes=32 * 1024 * 1024,
        ),
    )(x.reshape(B, L * C))

    y = y2d.reshape(B, l_out, C)
    if stride != 1:
        # Dense stride-1 averages were computed in-kernel; decimate here.
        # TODO(synk): fuse the decimation into the kernel if stride>1 is hot.
        y = y[:, ::stride, :]
    return y


def _reference_moving_avg(x, kernel_size, stride):
    """Pure-numpy reference reproducing the PyTorch semantics."""
    x = np.asarray(x)
    pad = (kernel_size - 1) // 2
    front = np.repeat(x[:, 0:1, :], pad, axis=1)
    end = np.repeat(x[:, -1:, :], pad, axis=1)
    xp = np.concatenate([front, x, end], axis=1)
    l_out = (xp.shape[1] - kernel_size) // stride + 1
    out = np.zeros((x.shape[0], l_out, x.shape[2]), dtype=np.float32)
    for l in range(l_out):
        out[:, l, :] = xp[:, l * stride:l * stride + kernel_size, :].mean(axis=1)
    return out


if __name__ == "__main__":
    key = jax.random.PRNGKey(0)
    cases = [
        # (B, L, C, kernel_size, stride)
        (2, 16, 32, 5, 1),     # canonical odd-kernel, stride-1 case
        (2, 16, 32, 4, 1),     # even kernel (L_out != L, as in PyTorch)
        (2, 16, 32, 5, 2),     # strided pooling
        (10, 16, 32, 25, 1),   # large kernel + multi-block batch tiling
    ]
    for (B, L, C, ks, st) in cases:
        key, sub = jax.random.split(key)
        x = jax.random.normal(sub, (B, L, C), dtype=jnp.float32)
        out = jax.block_until_ready(moving_avg(x, ks, st))
        ref = _reference_moving_avg(np.asarray(x), ks, st)
        np.testing.assert_allclose(np.asarray(out), ref, rtol=1e-5, atol=1e-5)
    print("KERNEL_OK")
</pallas_src>

<mosaic_0001>
module attributes {stable_mosaic.version = 11 : i64} {
  func.func @_moving_avg_kernel(%arg0: i32, %arg1: memref<2x512xf32, #tpu.memory_space<vmem>>, %arg2: memref<2x512xf32, #tpu.memory_space<vmem>>) attributes {dimension_semantics = [#tpu.dimension_semantics<parallel>], iteration_bounds = array<i64: 1>, scalar_prefetch = 0 : i64, scratch_operands = 0 : i64, tpu.core_type = #tpu.core_type<tc>, window_params = [{transform_indices = @transform_0, window_bounds = array<i64: 2, 512>}, {transform_indices = @transform_1, window_bounds = array<i64: 2, 512>}]} {
    %c0 = arith.constant 0 : index
    %c0_0 = arith.constant 0 : index
    %0 = vector.load %arg1[%c0, %c0_0] : memref<2x512xf32, #tpu.memory_space<vmem>>, vector<2x512xf32>
    %1 = vector.extract_strided_slice %0 {offsets = [0, 0], sizes = [2, 32], strides = [1, 1]} : vector<2x512xf32> to vector<2x32xf32>
    %2 = vector.extract_strided_slice %0 {offsets = [0, 480], sizes = [2, 32], strides = [1, 1]} : vector<2x512xf32> to vector<2x32xf32>
    %3 = tpu.concatenate %1, %1, %0, %2, %2 in 1 : vector<2x32xf32>, vector<2x32xf32>, vector<2x512xf32>, vector<2x32xf32>, vector<2x32xf32> -> vector<2x640xf32>
    %cst = arith.constant 0.000000e+00 : f32
    %4 = vector.broadcast %cst : f32 to vector<2x512xf32>
    %5 = vector.extract_strided_slice %3 {offsets = [0, 0], sizes = [2, 512], strides = [1, 1]} : vector<2x640xf32> to vector<2x512xf32>
    %6 = arith.addf %4, %5 : vector<2x512xf32>
    %7 = vector.extract_strided_slice %3 {offsets = [0, 32], sizes = [2, 512], strides = [1, 1]} : vector<2x640xf32> to vector<2x512xf32>
    %8 = arith.addf %6, %7 : vector<2x512xf32>
    %9 = vector.extract_strided_slice %3 {offsets = [0, 64], sizes = [2, 512], strides = [1, 1]} : vector<2x640xf32> to vector<2x512xf32>
    %10 = arith.addf %8, %9 : vector<2x512xf32>
    %11 = vector.extract_strided_slice %3 {offsets = [0, 96], sizes = [2, 512], strides = [1, 1]} : vector<2x640xf32> to vector<2x512xf32>
    %12 = arith.addf %10, %11 : vector<2x512xf32>
    %13 = vector.extract_strided_slice %3 {offsets = [0, 128], sizes = [2, 512], strides = [1, 1]} : vector<2x640xf32> to vector<2x512xf32>
    %14 = arith.addf %12, %13 : vector<2x512xf32>
    %cst_1 = arith.constant 2.000000e-01 : f32
    %15 = vector.broadcast %cst_1 : f32 to vector<2x512xf32>
    %16 = arith.mulf %14, %15 : vector<2x512xf32>
    %c0_2 = arith.constant 0 : index
    %c0_3 = arith.constant 0 : index
    %17 = vector.load %arg2[%c0_2, %c0_3] : memref<2x512xf32, #tpu.memory_space<vmem>>, vector<2x512xf32>
    tpu.vector_store %arg2[%c0_2, %c0_3], %16 {strides = array<i32>} : memref<2x512xf32, #tpu.memory_space<vmem>>, vector<2x512xf32>,
    return
  }
  func.func @transform_0(%arg0: i32) -> (i32, i32) {
    %c0_i32 = arith.constant 0 : i32
    %c0_i32_0 = arith.constant 0 : i32
    return %arg0, %c0_i32 : i32, i32
  }
  func.func @transform_1(%arg0: i32) -> (i32, i32) {
    %c0_i32 = arith.constant 0 : i32
    %c0_i32_0 = arith.constant 0 : i32
    return %arg0, %c0_i32 : i32, i32
  }
}

</mosaic_0001>

<bundles_post_ra>
// kernel: tpu_custom_call.1
= control target key start
LH: loop header
LB: loop body
LE: loop exit
PB: predicated region body
PF: predicated region fallthrough
CT: control target
= control target key end

     0   :  { %6 = vsyncpa [#allocation3], 0  ;;  %s329_s0 = inlined_call_operand.hbm [shape: f32[2,512], index: 0, kind: input, shape index: {}]   ;;  %s330_s1 = inlined_call_operand.hbm [shape: f32[2,512], index: 1, kind: output, shape index: {}]  }
   0x1   :  { %7 = vsyncpa [#allocation4], 0  ;;  %s243_s6 = smov [#allocation2]   ;;  %s195_s10 = scalar_lea.hbm %s329_s0, 128 }
   0x2   :  { %s14_s7 = sshll.u32 %s243_s6, 4  ;;  %p196_p0 = scmp.ne.s32.totalorder %s329_s0, %s195_s10  ;;  %s15_s7 = int_to_ptr.vmem [resolvable:$true] %s14_s7 }
   0x3   :  { %p199_p1 = scmp.lt.u32.totalorder %s195_s10, %s329_s0 }
   0x5   :  { %p201_p2 = pnand %p199_p1, %p196_p0 }
   0x7   :  { %204 = shalt.err (!%p201_p2)
}
   0x8   :  { %s205_s15 = scalar_lea.vmem %s15_s7, 128  ;;  %p210_p4 = scmp.lt.s32.totalorder %s15_s7, %s15_s7 }
   0x9   :  { %p206_p3 = scmp.ne.s32.totalorder %s15_s7, %s205_s15  ;;  %p211_p5 = scmp.lt.s32.totalorder %s205_s15, %s205_s15 }
   0xb   :  { %p212_p6 = por %p211_p5, %p210_p4 }
   0xd   :  { %p213_p7 = pnand %p212_p6, %p206_p3 }
   0xf   :  { %216 = shalt.err (!%p213_p7)
}
  0x10   :  { %17 = dma.hbm_to_vmem [thread:$0]  %s329_s0, 128, %s15_s7, [#allocation3]  }
  0x11   :  { %239 = dma.done.wait [#allocation3], 128  }
  0x12   :  { %240 = vsyncadd [#allocation3], 4294967168  ;;  %v26_v0 = vlaneseq  ;;  %v244_v1 = vmov 1983009808   ;;  %v21_v6 = vld [vmem:[#allocation2] sm:$0xff]  ;;  %s245_s18 = smov 64  }
  0x13   :  { %v24_v2 = vunpack.c.l.s4 %v244_v1  ;;  %v33_v8 = vcombine.high %v21_v6, %v21_v6  ;;  %s246_s19 = smov 32   ;;  %s247_s0 = smov 96   ;;  %vm64_vm0 = vcmask 261120   ;;  %vm51_vm1 = vcmask 523264  }
  0x14   :  { %v27_v3 = vshrl.u32 %v26_v0, 7  ;;  %vm68_vm2 = vcmask 785408   ;;  %s248_s20 = smov [#allocation5]  }
  0x15   :  { %v25_v4 = vunpack.c.0.s8 %v24_v2  ;;  %s179_s21 = sshll.u32 %s248_s20, 4  ;;  %s180_s21 = int_to_ptr.vmem [resolvable:$true] %s179_s21 }
  0x16   :  { %s217_s22 = scalar_lea.vmem %s180_s21, 128  ;;  %p222_p9 = scmp.lt.s32.totalorder %s180_s21, %s180_s21 }
  0x17   :  { %v271_v5 = vsub.s32 %v25_v4, %v27_v3  ;;  %p218_p8 = scmp.ne.s32.totalorder %s180_s21, %s217_s22  ;;  %p223_p10 = scmp.lt.s32.totalorder %s217_s22, %s217_s22 }
  0x19   :  { %v29_v7 = vrot.slane %v21_v6, %v271_v5  ;;  %v40_v9 = vrot.slane %v33_v8, %v271_v5  ;;  %p224_p11 = por %p223_p10, %p222_p9 }
  0x1b   :  { %43 = vrot.lane.b32.xlu1 %v29_v7, %s245_s18  ;;  %30 = vrot.lane.b32.xlu0 %v29_v7, %s246_s19  ;;  %v42_v10 = vcombine.high %v40_v9, %v40_v9  ;;  %v41_v11 = vcombine.high %v29_v7, %v29_v7  ;;  %p225_p12 = pnand %p224_p11, %p218_p8 }
  0x1f   :  { %60 = vrot.lane.b32.xlu1 %v42_v10, %s247_s0  ;;  %49 = vrot.lane.b32.xlu0 %v42_v10, %s245_s18 }
  0x23   :  { %47 = vrot.lane.b32.xlu1 %v40_v9, %s245_s18  ;;  %45 = vrot.lane.b32.xlu0 %v41_v11, %s245_s18 }
  0x8d   :  { %v44_v12 = vpop.permute.xlu1 %43  ;;  %v31_v13 = vpop.permute.xlu0 %30 }
  0x8e   :  { %v65_v14 = vsel %vm64_vm0, %v21_v6, %v31_v13 }
  0x8f   :  { %v66_v15 = vsel %vm51_vm1, %v65_v14, %v44_v12 }
  0x90   :  { %98 = vrot.lane.b32.xlu1 %v66_v15, %s245_s18  ;;  %76 = vrot.lane.b32.xlu0 %v66_v15, %s247_s0 }
  0x91   :  { %v61_v16 = vpop.permute.xlu1 %60  ;;  %v50_v17 = vpop.permute.xlu0 %49 }
  0x92   :  { %v67_v23 = vsel %vm51_vm1, %v50_v17, %v61_v16 }
  0x93   :  { %v69_v24 = vsel %vm68_vm2, %v67_v23, %v42_v10 }
  0x94   :  { %120 = vrot.lane.b32.xlu0 %v66_v15, %s246_s19 }
  0x95   :  { %v48_v18 = vpop.permute.xlu1 %47  ;;  %v46_v19 = vpop.permute.xlu0 %45 }
  0x96   :  { %v52_v20 = vsel %vm51_vm1, %v44_v12, %v46_v19  ;;  %v53_v21 = vsel %vm51_vm1, %v46_v19, %v48_v18  ;;  %v54_v22 = vsel %vm51_vm1, %v48_v18, %v50_v17 }
  0x97   :  { %78 = vrot.lane.b32.xlu1 %v52_v20, %s247_s0 }
  0x98   :  { %80 = vrot.lane.b32.xlu0 %v53_v21, %s247_s0 }
  0x9b   :  { %102 = vrot.lane.b32.xlu1 %v53_v21, %s245_s18 }
  0x9c   :  { %100 = vrot.lane.b32.xlu0 %v52_v20, %s245_s18 }
  0x9f   :  { %122 = vrot.lane.b32.xlu1 %v52_v20, %s246_s19 }
  0xa0   :  { %124 = vrot.lane.b32.xlu0 %v53_v21, %s246_s19 }
  0xa3   :  { %82 = vrot.lane.b32.xlu1 %v54_v22, %s247_s0 }
  0xa4   :  { %104 = vrot.lane.b32.xlu0 %v54_v22, %s245_s18 }
  0xa7   :  { %106 = vrot.lane.b32.xlu1 %v69_v24, %s245_s18 }
  0xa8   :  { %84 = vrot.lane.b32.xlu0 %v69_v24, %s247_s0 }
  0xab   :  { %126 = vrot.lane.b32.xlu1 %v54_v22, %s246_s19 }
  0xac   :  { %128 = vrot.lane.b32.xlu0 %v69_v24, %s246_s19 }
 0x102   :  { %v77_v25 = vpop.permute.xlu0 %76  ;;  %v99_v26 = vpop.permute.xlu1 %98 }
 0x106   :  { %v121_v27 = vpop.permute.xlu0 %120 }
 0x109   :  { %v79_v28 = vpop.permute.xlu1 %78 }
 0x10a   :  { %v81_v29 = vpop.permute.xlu0 %80  ;;  %v86_v32 = vsel %vm68_vm2, %v77_v25, %v79_v28 }
 0x10b   :  { %v87_v33 = vsel %vm68_vm2, %v79_v28, %v81_v29  ;;  %v94_v36 = vadd.f32 %v86_v32, %v66_v15 }
 0x10c   :  { %v95_v39 = vadd.f32 %v87_v33, %v52_v20 }
 0x10d   :  { %v103_v30 = vpop.permute.xlu1 %102 }
 0x10e   :  { %v101_v31 = vpop.permute.xlu0 %100 }
 0x10f   :  { %v108_v34 = vsel %vm51_vm1, %v99_v26, %v101_v31  ;;  %v109_v38 = vsel %vm51_vm1, %v101_v31, %v103_v30 }
 0x110   :  { %v116_v40 = vadd.f32 %v108_v34, %v94_v36  ;;  %v117_v44 = vadd.f32 %v109_v38, %v95_v39 }
 0x111   :  { %v123_v35 = vpop.permute.xlu1 %122 }
 0x112   :  { %v125_v37 = vpop.permute.xlu0 %124  ;;  %v130_v41 = vsel %vm64_vm0, %v121_v27, %v123_v35 }
 0x113   :  { %v131_v42 = vsel %vm64_vm0, %v123_v35, %v125_v37  ;;  %v138_v47 = vadd.f32 %v130_v41, %v116_v40 }
 0x114   :  { %v139_v48 = vadd.f32 %v131_v42, %v117_v44 }
 0x115   :  { %v83_v43 = vpop.permute.xlu1 %82  ;;  %v142_v54 = vadd.f32 %v138_v47, %v52_v20 }
 0x116   :  { %v88_v45 = vsel %vm68_vm2, %v81_v29, %v83_v43  ;;  %v105_v46 = vpop.permute.xlu0 %104  ;;  %v143_v55 = vadd.f32 %v139_v48, %v53_v21 }
 0x117   :  { %v96_v49 = vadd.f32 %v88_v45, %v53_v21  ;;  %v110_v51 = vsel %vm51_vm1, %v103_v30, %v105_v46  ;;  %v146_v1 = vmul.f32 0.2, %v142_v54 }
 0x118   :  { %v147_v2 = vmul.f32 0.2, %v143_v55 }
 0x119   :  { %v107_v50 = vpop.permute.xlu1 %106  ;;  %v118_v57 = vadd.f32 %v110_v51, %v96_v49 }
 0x11a   :  { %v85_v52 = vpop.permute.xlu0 %84  ;;  %v111_v58 = vsel %vm51_vm1, %v105_v46, %v107_v50  ;;  %v154_v8 = vcombine.low %v146_v1, %v147_v2 }
 0x11b   :  { %v89_v53 = vsel %vm68_vm2, %v83_v43, %v85_v52 }
 0x11c   :  { %v97_v56 = vadd.f32 %v89_v53, %v54_v22  ;;  %v162_v11 = vrot.slane %v154_v8, %v271_v5 }
 0x11d   :  { %v127_v59 = vpop.permute.xlu1 %126 }
 0x11e   :  { %v132_v60 = vsel %vm64_vm0, %v125_v37, %v127_v59  ;;  %v119_v61 = vadd.f32 %v111_v58, %v97_v56  ;;  %v129_v62 = vpop.permute.xlu0 %128 }
 0x11f   :  { %v140_v63 = vadd.f32 %v132_v60, %v118_v57  ;;  %v133_v0 = vsel %vm64_vm0, %v127_v59, %v129_v62 }
 0x120   :  { %v141_v3 = vadd.f32 %v133_v0, %v119_v61 }
 0x121   :  { %v144_v4 = vadd.f32 %v140_v63, %v54_v22 }
 0x122   :  { %v145_v6 = vadd.f32 %v141_v3, %v69_v24 }
 0x123   :  { %v148_v7 = vmul.f32 0.2, %v144_v4 }
 0x124   :  { %v149_v9 = vmul.f32 0.2, %v145_v6 }
 0x126   :  { %v155_v10 = vcombine.low %v148_v7, %v149_v9 }
 0x128   :  { %v169_v12 = vrot.slane %v155_v10, %v271_v5 }
 0x12a   :  { %v170_v13 = vcombine.low %v162_v11, %v169_v12 }
 0x12c   :  { %172 = vst [vmem:[#allocation5] sm:$0xff] %v170_v13 }
 0x12d   :  { %228 = shalt.err (!%p225_p12)
}
 0x12e   :  { %s229_s25 = scalar_lea.hbm %s330_s1, 128 }
 0x12f   :  { %p230_p13 = scmp.ne.s32.totalorder %s330_s1, %s229_s25  ;;  %p233_p0 = scmp.lt.u32.totalorder %s229_s25, %s330_s1 }
 0x131   :  { %p235_p1 = pnand %p233_p0, %p230_p13 }
 0x133   :  { %238 = shalt.err (!%p235_p1)
}
 0x134   :  { %182 = dma.vmem_to_hbm [thread:$0]  %s180_s21, 128, %s330_s1, [#allocation4]  }
 0x135   :  { %241 = dma.done.wait [#allocation4], 128  }
 0x136   :  { %242 = vsyncadd [#allocation4], 4294967168 }
 0x137   :  { %186 = vsyncpa [#allocation3], 1 }
 0x138   :  { %187 = vsyncpa [#allocation4], 1 }

</bundles_post_ra>
